<compile_context>
chip_gen: v5e
topology: v5e:2x2
jax: 0.10.0
libtpu: 0.0.40
codegen_flags: <defaults>
</compile_context>

<pallas_src>
import functools

import jax
import jax.numpy as jnp
from jax.experimental import pallas as pl
from jax.experimental.pallas import tpu as pltpu

_EPS = 1e-5


# ------------------------------ tiling helpers ------------------------------ #

def _round_up(x, m):
    return (x + m - 1) // m * m


def _pick_tiles(M, Np):
    """Tile sizes for the (M, N) output of one conv matmul.

    TM is a multiple of 16 (bf16 packs 16 rows per sublane group).  We also make
    sure the product of the two "parallel" grid axes is >= 2 so both v7x
    TensorCores are used.
    """
    Mp = _round_up(M, 16)
    tm = next(c for c in (512, 256, 128, 64, 32, 16) if Mp % c == 0)
    tn = 256 if Np % 256 == 0 else 128
    if (Mp // tm) * (Np // tn) < 2:
        if tn == 256:               # Np >= 256 here -> splitting N yields >= 2 blocks
            tn = 128
        elif tm >= 32:              # halves stay multiples of 16 and divide Mp
            tm //= 2
    return Mp, tm, tn


def _pick_tk(k_pad):
    if k_pad <= 1024:
        return k_pad
    for c in (1024, 896, 768, 640, 512, 384, 256, 128):
        if k_pad % c == 0:
            return c
    return 128                      # unreachable: k_pad is a multiple of 128


_VMEM_CAP = None


def _vmem_cap_bytes():
    # v5e/v6e: 128 MiB physical VMEM per TensorCore -> allow ~96 MiB requests.
    # v7x:     64 MiB                               -> keep requests <= 48 MiB.
    try:
        info = pltpu.get_tpu_info()
        phys = int(getattr(info, "vmem_capacity_bytes", 64 << 20))
    except Exception:
        phys = 64 << 20
    return (96 << 20) if phys >= (128 << 20) else (48 << 20)


def _vmem_limit(tile_bytes):
    global _VMEM_CAP
    if _VMEM_CAP is None:
        _VMEM_CAP = _vmem_cap_bytes()
    return int(min(max(2 * tile_bytes, 16 << 20), _VMEM_CAP))


# ------------------------------ Pallas kernels ------------------------------ #

def _conv_stats_kernel(p_ref, w_ref, y_ref, s_ref, acc_ref):
    """Tiled im2col matmul (bf16 inputs -> f32 acc -> bf16 y) + per-tile column stats."""
    k = pl.program_id(2)

    @pl.when(k == 0)
    def _():
        acc_ref[...] = jnp.zeros_like(acc_ref)

    acc_ref[...] += jnp.dot(p_ref[...], w_ref[...],
                            preferred_element_type=jnp.float32)

    @pl.when(k == pl.num_programs(2) - 1)
    def _():
        y = acc_ref[...]
        y_ref[...] = y.astype(y_ref.dtype)
        # two direct sub-block stores (no concatenate copy on the critical path)
        s_ref[0, 0:1, :] = jnp.sum(y, axis=0, keepdims=True)
        s_ref[0, 1:2, :] = jnp.sum(y * y, axis=0, keepdims=True)


def _bn_apply_kernel(y_ref, ss_ref, o_ref, *, relu):
    ss = ss_ref[...]                                   # (2, TN) f32: [scale; shift]
    y = y_ref[...].astype(jnp.float32) * ss[0:1, :] + ss[1:2, :]
    if relu:
        y = jnp.maximum(y, 0.0)
    o_ref[...] = y.astype(o_ref.dtype)


def _bn_apply_res_kernel(y_ref, ss_ref, r_ref, o_ref, *, relu):
    ss = ss_ref[...]
    y = (y_ref[...].astype(jnp.float32) * ss[0:1, :] + ss[1:2, :]
         + r_ref[...].astype(jnp.float32))
    if relu:
        y = jnp.maximum(y, 0.0)
    o_ref[...] = y.astype(o_ref.dtype)


def _pool_fc_kernel(x_ref, w_ref, b_ref, o_ref):
    # global average pool over the spatial axis + linear head (tiny)
    feat = jnp.mean(x_ref[...].astype(jnp.float32), axis=1)          # (B, C)
    o_ref[...] = jnp.dot(feat, w_ref[...],
                         preferred_element_type=jnp.float32) + b_ref[...]


# ------------------------------ pallas wrappers ------------------------------ #

def pallas_conv_stats(patches_bf16, w_bf16, tm, tn, tk):
    Mp, Kp = patches_bf16.shape
    Np = w_bf16.shape[1]
    nm, nn, nk = Mp // tm, Np // tn, Kp // tk
    tile_bytes = (2 * (tm * tk * 2 + tk * tn * 2)        # bf16 inputs, double-buffered
                  + 2 * (tm * tn * 2 + 2 * tn * 4)        # bf16 y + f32 stats outputs
                  + tm * tn * 4)                          # f32 accumulator scratch
    return pl.pallas_call(
        _conv_stats_kernel,
        out_shape=(jax.ShapeDtypeStruct((Mp, Np), jnp.bfloat16),
                   jax.ShapeDtypeStruct((nm, 2, Np), jnp.float32)),
        grid=(nm, nn, nk),
        in_specs=[pl.BlockSpec((tm, tk), lambda i, j, k: (i, k)),
                  pl.BlockSpec((tk, tn), lambda i, j, k: (k, j))],
        out_specs=(pl.BlockSpec((tm, tn), lambda i, j, k: (i, j)),
                   pl.BlockSpec((1, 2, tn), lambda i, j, k: (i, 0, j))),
        scratch_shapes=[pltpu.VMEM((tm, tn), jnp.float32)],
        compiler_params=pltpu.CompilerParams(
            dimension_semantics=("parallel", "parallel", "arbitrary"),
            vmem_limit_bytes=_vmem_limit(tile_bytes)),
    )(patches_bf16, w_bf16)


def pallas_bn_apply(y, ss, residual, relu, tm, tn):
    """y*scale + shift (+residual) (+ReLU); bf16 in / bf16 out, f32 scale/shift."""
    Mp, Np = y.shape
    nm, nn = Mp // tm, Np // tn
    if residual is None:
        kern = functools.partial(_bn_apply_kernel, relu=relu)
        args = (y, ss)
        in_specs = [pl.BlockSpec((tm, tn), lambda i, j: (i, j)),
                    pl.BlockSpec((2, tn), lambda i, j: (0, j))]
        tile_bytes = 2 * (2 * tm * tn * 2 + 2 * tn * 4)
    else:
        kern = functools.partial(_bn_apply_res_kernel, relu=relu)
        args = (y, ss, residual)
        in_specs = [pl.BlockSpec((tm, tn), lambda i, j: (i, j)),
                    pl.BlockSpec((2, tn), lambda i, j: (0, j)),
                    pl.BlockSpec((tm, tn), lambda i, j: (i, j))]
        tile_bytes = 2 * (3 * tm * tn * 2 + 2 * tn * 4)
    return pl.pallas_call(
        kern,
        out_shape=jax.ShapeDtypeStruct((Mp, Np), jnp.bfloat16),
        grid=(nm, nn),
        in_specs=in_specs,
        out_specs=pl.BlockSpec((tm, tn), lambda i, j: (i, j)),
        compiler_params=pltpu.CompilerParams(
            dimension_semantics=("parallel", "parallel"),
            vmem_limit_bytes=_vmem_limit(tile_bytes)),
    )(*args)


def pallas_pool_fc(x_bhwc_flat, w, b):
    B, HW, C = x_bhwc_flat.shape
    N = w.shape[1]
    tile_bytes = 2 * (B * HW * C * 2 + C * N * 4 + N * 4 + B * N * 4)
    return pl.pallas_call(
        _pool_fc_kernel,
        out_shape=jax.ShapeDtypeStruct((B, N), jnp.float32),
        grid=(1,),
        in_specs=[pl.BlockSpec((B, HW, C), lambda i: (0, 0, 0)),
                  pl.BlockSpec((C, N), lambda i: (0, 0)),
                  pl.BlockSpec((1, N), lambda i: (0, 0))],
        out_specs=pl.BlockSpec((B, N), lambda i: (0, 0)),
        compiler_params=pltpu.CompilerParams(
            dimension_semantics=("arbitrary",),
            vmem_limit_bytes=_vmem_limit(tile_bytes)),
    )(x_bhwc_flat, w, b)


# --------------------------------- JAX glue ---------------------------------- #

def im2col_bf16(x_nhwc, k, stride, pad, k_pad):
    """Host-side im2col done entirely in bf16; K zero-padding folded into the concat."""
    B, H, W, C = x_nhwc.shape
    xp = jnp.pad(x_nhwc, ((0, 0), (pad, pad), (pad, pad), (0, 0))) if pad else x_nhwc
    Ho = (H + 2 * pad - k) // stride + 1
    Wo = (W + 2 * pad - k) // stride + 1
    cols = [xp[:, dy:dy + Ho * stride:stride, dx:dx + Wo * stride:stride, :]
            for dy in range(k) for dx in range(k)]
    kk = k * k * C
    if k_pad > kk:
        cols.append(jnp.zeros((B, Ho, Wo, k_pad - kk), x_nhwc.dtype))
    patches = jnp.concatenate(cols, axis=-1)           # (B,Ho,Wo,k_pad), (kh,kw,cin)
    return patches.reshape(B * Ho * Wo, k_pad), Ho, Wo


def conv_bn(x_nhwc, w_hwio, gamma, beta, stride, relu, residual_nhwc=None):
    """conv (im2col matmul) -> train-mode BatchNorm -> (+residual) -> (ReLU), bf16 out."""
    B = x_nhwc.shape[0]
    k, _, cin, cout = w_hwio.shape
    pad = 1 if k == 3 else 0

    K = k * k * cin
    Kp = _round_up(K, 128)             # MXU-clean reduction dim (zero columns are free)
    Np = _round_up(cout, 128)          # lane-dense (>=128) y / stats / out stores

    patches, Ho, Wo = im2col_bf16(x_nhwc, k, stride, pad, Kp)      # (M, Kp) bf16
    M = patches.shape[0]
    Mp, tm, tn = _pick_tiles(M, Np)
    tk = _pick_tk(Kp)
    if Mp != M:                        # zero rows do not perturb the column stats
        patches = jnp.pad(patches, ((0, Mp - M), (0, 0)))

    w2d = jnp.pad(w_hwio.reshape(K, cout),
                  ((0, Kp - K), (0, Np - cout))).astype(jnp.bfloat16)

    y, stats = pallas_conv_stats(patches, w2d, tm, tn, tk)         # bf16 y, f32 stats

    # Global (train-mode) BatchNorm statistics over the M real rows = (B, Ho, Wo).
    s = jnp.sum(stats, axis=0)                                     # (2, Np) f32
    mean = s[0] / M
    var = jnp.maximum(s[1] / M - mean * mean, 0.0)                 # biased variance
    # TODO(synk): E[x^2]-E[x]^2 cancels badly when |mean| >> std; a two-pass centered
    #             sum-of-squares would track the f32 PyTorch reference more tightly.
    g = jnp.pad(gamma, (0, Np - cout), constant_values=1.0)
    b = jnp.pad(beta, (0, Np - cout))
    scale = g * jax.lax.rsqrt(var + _EPS)
    shift = b - mean * scale
    ss = jnp.stack([scale, shift], axis=0)                         # (2, Np) f32

    res = None
    if residual_nhwc is not None:
        res = residual_nhwc.reshape(-1, cout).astype(jnp.bfloat16)
        res = jnp.pad(res, ((0, Mp - M), (0, Np - cout)))

    out = pallas_bn_apply(y, ss, res, relu, tm, tn)                # (Mp, Np) bf16
    return out[:M, :cout].reshape(B, Ho, Wo, cout)


def basic_block(x, bp, stride):
    out = conv_bn(x, bp["w1"], bp["g1"], bp["b1"], stride, relu=True)
    if "ws" in bp:      # projection shortcut (1x1 conv + BN)
        sc = conv_bn(x, bp["ws"], bp["gs"], bp["bs"], stride, relu=False)
    else:               # identity shortcut
        sc = x
    return conv_bn(out, bp["w2"], bp["g2"], bp["b2"], 1, relu=True,
                   residual_nhwc=sc)


def resnet_forward(params, x_nchw):
    # NCHW -> NHWC, cast to bf16 ONCE; all activations stay bf16 through the network.
    x = jnp.transpose(x_nchw, (0, 2, 3, 1)).astype(jnp.bfloat16)
    out = conv_bn(x, params["conv1"], params["g1"], params["b1"], 1, relu=True)
    for layer in params["layers"]:
        for bp, stride in layer:
            out = basic_block(out, bp, stride)
    B, H, W, C = out.shape
    logits = pallas_pool_fc(out.reshape(B, H * W, C),
                            params["fc_w"], params["fc_b"].reshape(1, -1))
    return logits


# ------------------------------ parameter init ------------------------------- #

def _conv_w(key, k, cin, cout):
    fan_in = k * k * cin
    return (jax.random.normal(key, (k, k, cin, cout), jnp.float32)
            * jnp.sqrt(2.0 / fan_in))


def make_params(key, num_blocks=(1, 1, 1, 1), num_classes=10):
    keys = iter(jax.random.split(key, 256))
    params = {
        "conv1": _conv_w(next(keys), 3, 3, 64),
        "g1": jnp.ones((64,), jnp.float32),
        "b1": jnp.zeros((64,), jnp.float32),
    }
    in_planes = 64
    layers = []
    for planes, n, first_stride in zip((64, 128, 256, 512), num_blocks,
                                       (1, 2, 2, 2)):
        layer = []
        strides = [first_stride] + [1] * (n - 1)
        for s in strides:
            bp = {
                "w1": _conv_w(next(keys), 3, in_planes, planes),
                "g1": jnp.ones((planes,), jnp.float32),
                "b1": jnp.zeros((planes,), jnp.float32),
                "w2": _conv_w(next(keys), 3, planes, planes),
                "g2": jnp.ones((planes,), jnp.float32),
                "b2": jnp.zeros((planes,), jnp.float32),
            }
            if s != 1 or in_planes != planes:
                bp["ws"] = _conv_w(next(keys), 1, in_planes, planes)
                bp["gs"] = jnp.ones((planes,), jnp.float32)
                bp["bs"] = jnp.zeros((planes,), jnp.float32)
            layer.append((bp, s))
            in_planes = planes
        layers.append(layer)
    params["layers"] = layers
    params["fc_w"] = (jax.random.normal(next(keys), (512, num_classes),
                                        jnp.float32) * jnp.sqrt(1.0 / 512))
    params["fc_b"] = jnp.zeros((num_classes,), jnp.float32)
    return params


# ----------------------------------- main ------------------------------------ #

if __name__ == "__main__":
    key = jax.random.PRNGKey(0)
    k_x, k_p = jax.random.split(key)
    # small input consistent with conv1(3 -> 64): batch=2, channels=3, spatial=16
    x = jax.random.normal(k_x, (2, 3, 16, 16), jnp.float32)
    params = make_params(k_p, num_blocks=(1, 1, 1, 1), num_classes=10)

    logits = resnet_forward(params, x)
    jax.block_until_ready(logits)
    assert logits.shape == (2, 10)
    print("KERNEL_OK")
</pallas_src>

<mosaic_0001>
module attributes {stable_mosaic.version = 11 : i64} {
  func.func @_conv_stats_kernel(%arg0: i32, %arg1: i32, %arg2: i32, %arg3: memref<256x128xbf16, #tpu.memory_space<vmem>>, %arg4: memref<128x128xbf16, #tpu.memory_space<vmem>>, %arg5: memref<256x128xbf16, #tpu.memory_space<vmem>>, %arg6: memref<1x2x128xf32, #tpu.memory_space<vmem>>, %arg7: memref<256x128xf32, #tpu.memory_space<vmem>>) attributes {dimension_semantics = [#tpu.dimension_semantics<parallel>, #tpu.dimension_semantics<parallel>, #tpu.dimension_semantics<arbitrary>], iteration_bounds = array<i64: 2, 1, 1>, scalar_prefetch = 0 : i64, scratch_operands = 1 : i64, tpu.core_type = #tpu.core_type<tc>, window_params = [{transform_indices = @transform_0, window_bounds = array<i64: 256, 128>}, {transform_indices = @transform_1, window_bounds = array<i64: 128, 128>}, {transform_indices = @transform_2, window_bounds = array<i64: 256, 128>}, {transform_indices = @transform_3, window_bounds = array<i64: 1, 2, 128>}]} {
    %c0_i32 = arith.constant 0 : i32
    %0 = arith.cmpi eq, %arg2, %c0_i32 : i32
    %1 = arith.extui %0 : i1 to i32
    %c0_i32_0 = arith.constant 0 : i32
    %2 = arith.cmpi ne, %1, %c0_i32_0 : i32
    scf.if %2 {
      %cst_10 = arith.constant 0.000000e+00 : f32
      %12 = vector.broadcast %cst_10 : f32 to vector<256x128xf32>
      %c0_11 = arith.constant 0 : index
      %c0_12 = arith.constant 0 : index
      %13 = vector.load %arg7[%c0_11, %c0_12] : memref<256x128xf32, #tpu.memory_space<vmem>>, vector<256x128xf32>
      tpu.vector_store %arg7[%c0_11, %c0_12], %12 {strides = array<i32>} : memref<256x128xf32, #tpu.memory_space<vmem>>, vector<256x128xf32>,
    } else {
    }
    %c0 = arith.constant 0 : index
    %c0_1 = arith.constant 0 : index
    %3 = vector.load %arg7[%c0, %c0_1] : memref<256x128xf32, #tpu.memory_space<vmem>>, vector<256x128xf32>
    %c0_2 = arith.constant 0 : index
    %c0_3 = arith.constant 0 : index
    %4 = vector.load %arg3[%c0_2, %c0_3] : memref<256x128xbf16, #tpu.memory_space<vmem>>, vector<256x128xbf16>
    %c0_4 = arith.constant 0 : index
    %c0_5 = arith.constant 0 : index
    %5 = vector.load %arg4[%c0_4, %c0_5] : memref<128x128xbf16, #tpu.memory_space<vmem>>, vector<128x128xbf16>
    %cst = arith.constant dense<0.000000e+00> : vector<256x128xf32>
    %6 = tpu.matmul %4, %5, %cst {dimension_numbers = #tpu.dot_dimension_numbers<[1], [0], [0], [1], [0, 0, 1, 1], [], []>} : vector<256x128xbf16>, vector<128x128xbf16>, vector<256x128xf32> -> vector<256x128xf32>
    %7 = arith.addf %3, %6 : vector<256x128xf32>
    %c0_6 = arith.constant 0 : index
    %c0_7 = arith.constant 0 : index
    %8 = vector.load %arg7[%c0_6, %c0_7] : memref<256x128xf32, #tpu.memory_space<vmem>>, vector<256x128xf32>
    tpu.vector_store %arg7[%c0_6, %c0_7], %7 {strides = array<i32>} : memref<256x128xf32, #tpu.memory_space<vmem>>, vector<256x128xf32>,
    %c0_i32_8 = arith.constant 0 : i32
    %9 = arith.cmpi eq, %arg2, %c0_i32_8 : i32
    %10 = arith.extui %9 : i1 to i32
    %c0_i32_9 = arith.constant 0 : i32
    %11 = arith.cmpi ne, %10, %c0_i32_9 : i32
    scf.if %11 {
      %c0_10 = arith.constant 0 : index
      %c0_11 = arith.constant 0 : index
      %12 = vector.load %arg7[%c0_10, %c0_11] : memref<256x128xf32, #tpu.memory_space<vmem>>, vector<256x128xf32>
      %13 = arith.truncf %12 : vector<256x128xf32> to vector<256x128xbf16>
      %c0_12 = arith.constant 0 : index
      %c0_13 = arith.constant 0 : index
      %14 = vector.load %arg5[%c0_12, %c0_13] : memref<256x128xbf16, #tpu.memory_space<vmem>>, vector<256x128xbf16>
      tpu.vector_store %arg5[%c0_12, %c0_13], %13 {strides = array<i32>} : memref<256x128xbf16, #tpu.memory_space<vmem>>, vector<256x128xbf16>,
      %cst_14 = arith.constant dense<0.000000e+00> : vector<128xf32>
      %15 = vector.multi_reduction <add>, %12, %cst_14 [0] : vector<256x128xf32> to vector<128xf32>
      %16 = vector.shape_cast %15 : vector<128xf32> to vector<1x128xf32>
      %c0_15 = arith.constant 0 : index
      %c0_16 = arith.constant 0 : index
      %c0_17 = arith.constant 0 : index
      %17 = vector.load %arg6[%c0_15, %c0_16, %c0_17] : memref<1x2x128xf32, #tpu.memory_space<vmem>>, vector<1x1x128xf32>
      %18 = vector.shape_cast %17 : vector<1x1x128xf32> to vector<1x128xf32>
      %19 = vector.shape_cast %16 : vector<1x128xf32> to vector<1x1x128xf32>
      tpu.vector_store %arg6[%c0_15, %c0_16, %c0_17], %19 {strides = array<i32>} : memref<1x2x128xf32, #tpu.memory_space<vmem>>, vector<1x1x128xf32>,
      %20 = arith.mulf %12, %12 : vector<256x128xf32>
      %cst_18 = arith.constant dense<0.000000e+00> : vector<128xf32>
      %21 = vector.multi_reduction <add>, %20, %cst_18 [0] : vector<256x128xf32> to vector<128xf32>
      %22 = vector.shape_cast %21 : vector<128xf32> to vector<1x128xf32>
      %c0_19 = arith.constant 0 : index
      %c1 = arith.constant 1 : index
      %c0_20 = arith.constant 0 : index
      %23 = vector.load %arg6[%c0_19, %c1, %c0_20] : memref<1x2x128xf32, #tpu.memory_space<vmem>>, vector<1x1x128xf32>
      %24 = vector.shape_cast %23 : vector<1x1x128xf32> to vector<1x128xf32>
      %25 = vector.shape_cast %22 : vector<1x128xf32> to vector<1x1x128xf32>
      tpu.vector_store %arg6[%c0_19, %c1, %c0_20], %25 {strides = array<i32>} : memref<1x2x128xf32, #tpu.memory_space<vmem>>, vector<1x1x128xf32>,
    } else {
    }
    return
  }
  func.func @transform_0(%arg0: i32, %arg1: i32, %arg2: i32) -> (i32, i32) {
    %c0_i32 = arith.constant 0 : i32
    return %arg0, %arg2 : i32, i32
  }
  func.func @transform_1(%arg0: i32, %arg1: i32, %arg2: i32) -> (i32, i32) {
    %c0_i32 = arith.constant 0 : i32
    return %arg2, %arg1 : i32, i32
  }
  func.func @transform_2(%arg0: i32, %arg1: i32, %arg2: i32) -> (i32, i32) {
    %c0_i32 = arith.constant 0 : i32
    return %arg0, %arg1 : i32, i32
  }
  func.func @transform_3(%arg0: i32, %arg1: i32, %arg2: i32) -> (i32, i32, i32) {
    %c0_i32 = arith.constant 0 : i32
    %c0_i32_0 = arith.constant 0 : i32
    return %arg0, %c0_i32, %arg1 : i32, i32, i32
  }
}

</mosaic_0001>

<bundles_post_ra>
// kernel: tpu_custom_call.1
= control target key start
LH: loop header
LB: loop body
LE: loop exit
PB: predicated region body
PF: predicated region fallthrough
CT: control target
= control target key end

     0   :  { %s1951_s0 = inlined_call_operand.hbm [shape: bf16[512,128], index: 0, kind: input, shape index: {}]   ;;  %s1952_s1 = inlined_call_operand.hbm [shape: bf16[128,128], index: 1, kind: input, shape index: {}]   ;;  %s1953_s2 = inlined_call_operand.hbm [shape: bf16[512,128], index: 2, kind: output, shape index: {0}]   ;;  %s1954_s3 = inlined_call_operand.hbm [shape: f32[2,2,128], index: 3, kind: output, shape index: {1}]  }
   0x1   :  { %1956 = sst [smem:[#allocation15_spill]] %s1952_s1 }
   0x2   :  { %9 = vsyncpa [#allocation4], 0 }
   0x3   :  { %11 = vsyncpa [#allocation4 + $0x1], 0 }
   0x4   :  { %12 = vsyncpa [#allocation7], 0 }
   0x5   :  { %13 = vsyncpa [#allocation5], 0 }
   0x6   :  { %15 = vsyncpa [#allocation5 + $0x1], 0 }
   0x7   :  { %16 = vsyncpa [#allocation10], 0 }
   0x8   :  { %18 = vsyncpa [#allocation10 + $0x1], 0  ;;  %s1600_s12 = smov 0   ;;  %s1602_s13 = smov 0  }
   0x9   :  { %s1604_s14 = smov 0   ;;  %s1606_s15 = smov 0  }
   0xa   :  { %s1608_s16 = smov 0   ;;  %s1610_s17 = smov 0  }
   0xb LB: > { %s1052_s18 = sadd.s32 4294967295, %s1573_s17   ;;  %s1053_s19 = sadd.s32 4294967294, %s1573_s17   ;;  %s1573_s17 = sphi %s1610_s17, %s24_s17   ;;  %s1569_s16 = sphi %s1608_s16, %s1970_s16   ;;  %s1565_s15 = sphi %s1606_s15, %s1969_s15   ;;  %s1561_s14 = sphi %s1604_s14, %s1968_s14   ;;  %s1557_s13 = sphi %s1602_s13, %s1967_s13   ;;  %s1553_s12 = sphi %s1600_s12, %s1966_s12  }
   0xc   : > { %p65_p0 = scmp.ne.s32.totalorder %s1557_s13, %s1553_s12  ;;  %p1634_p1 = scmp.eq.s32.totalorder %s1052_s18, 0 }
   0xd   : > { %p1638_p2 = scmp.eq.s32.totalorder %s1052_s18, 1  ;;  %p125_p3 = scmp.eq.s32.totalorder %s1053_s19, 1 }
   0xe   : > { %p1644_p4 = por %p1634_p1, %p65_p0  ;;  %p1054_p5 = scmp.ge.s32.totalorder %s1573_s17, 1 }
   0xf   : > { %p1649_p6 = por %p125_p3, %p65_p0  ;;  %p160_p7 = scmp.lt.s32.totalorder %s1573_s17, 3 }
  0x10   : > { %s1961_s1 = sld [smem:[#allocation15_spill]]  ;;  %s1575_s28 = smov [#allocation6]  }
  0x11   : > { %p1657_p8 = pnand %p1054_p5, %p160_p7  ;;  %s177_s29 = sshll.u32 %s1575_s28, 4  ;;  %s178_s29 = int_to_ptr.vmem [resolvable:$true] %s177_s29 }
  0x12   : > { %p1056_p11 = scmp.ge.s32.totalorder %s1573_s17, 2  ;;  %s1955_s30 = smov 64  }
  0x13   : > { %p1323_p9 = pneg %p1657_p8  ;;  %s1577_s4 = smov 4  }
  0x14   : > { %s43_s5 = sadd.s32 1, %s1569_s16  ;;  %s52_s6 = sadd.s32 1, %s1561_s14 }
  0x15   : > { %p1324_p10 = pnand %p1323_p9, %p1634_p1  ;;  %p45_p12 = scmp.ge.s32.totalorder %s43_s5, 2 }
  0x16   : > { %s175_s26 = sshll.u32 %s1961_s1, 4  ;;  %p59_p13 = scmp.ne.s32.totalorder %s1561_s14, %s1557_s13  ;;  %s176_s26 = int_to_ptr.hbm [resolvable:$true] %s175_s26 }
  0x17   : > { %1326 = dma.hbm_to_vmem [thread:$0]  (!%p1324_p10), %s176_s26, 1024, %s178_s29, [#allocation7], %s1955_s30, %s1955_s30, %s1577_s4  }
  0x18   : > { %p60_p0 = scmp.eq.s32.totalorder %s1573_s17, 0  ;;  %s1972_s5 = smov (%p45_p12, %s43_s5), 0 }
  0x19   : > { %p1682_p5 = por %p1638_p2, %p59_p13  ;;  %s47_s9 = ssub.s32 %s1569_s16, %s1972_s5 }
  0x1a   : > { %p1676_p3 = por %p60_p0, %p59_p13  ;;  %p1339_p7 = scmp.lt.s32.totalorder %s1573_s17, 2 }
  0x1b   : > { %p50_p9 = scmp.eq.s32.totalorder %s47_s9, 0  ;;  %s191_s10 = sand.u32 1, %s1561_s14  }
  0x1c   : > { %s1057_s11 = sshll.u32 %s191_s10, 7  ;;  %s1168_s19 = sshll.u32 %s1569_s16, 7 }
  0x1d   : > { %s1691_s18 = scalar_select %p50_p9, %s1561_s14, %s52_s6  }
  0x1e   : > { %s201_s26 = scalar_lea.hbm %s1951_s0, %s1168_s19  ;;  %s195_s28 = scalar_lea.vmem [#allocation3], %s1057_s11 }
  0x1f   : > { %s204_s29 = sshll.u32 %s195_s28, 4  ;;  %s202_s21 = sshll.u32 %s201_s26, 4  ;;  %s205_s29 = int_to_ptr.vmem [resolvable:$true] %s204_s29  ;;  %s203_s21 = int_to_ptr.hbm [resolvable:$true] %s202_s21 }
  0x20   : > { %p1328_p2 = pnand %p1339_p7, %p1676_p3  ;;  %s192_s30 = scalar_lea.sflag [#allocation4], %s191_s10 }
  0x21   : > { %s1965_s1 = smov 64   ;;  %216 = sbr.rel (%p1657_p8) target bundleno = 322 (0x142), region = 28 }
  0x22   : > { %1330 = dma.hbm_to_vmem [thread:$0]  (!%p1328_p2), %s203_s21, 2048, %s205_s29, %s192_s30, %s1965_s1, %s1965_s1, %s1577_s4  }
  0x23   : > { %s1705_s6 = sand.u32 (!%p1657_p8), 1, %s1557_s13  }
  0x24   : > { %s1061_s9 = sshll.u32 (!%p1657_p8), %s1705_s6, 7  ;;  %s219_s11 = scalar_lea.sflag (!%p1657_p8), [#allocation4], %s1705_s6 }
  0x25   : > { %s1711_s7 = scalar_lea.vmem (!%p1657_p8), [#allocation3], %s1061_s9 }
  0x26   : > { %1536 = dma.done.wait (%p1644_p4), %s219_s11, 2048  }
  0x27   : > { %1538 = vsyncadd (%p1644_p4), %s219_s11, 4294965248 }
  0x28   : > { %1540 = dma.done.wait (%p1634_p1), [#allocation7], 1024  }
  0x29   : > { %1542 = vsyncadd (%p1634_p1), [#allocation7], 4294966272  ;;  %v1192_v0 = vld [vmem:[#allocation6 + $0x38] sm:$0xff]  ;;  %v1191_v1 = vld [vmem:[#allocation6 + $0x30] sm:$0xff]  ;;  %s1749_s1 = scalar_lea.vmem [#allocation8], %s1061_s9  ;;  %s1193_s20 = sshll.u32 %s1565_s15, 7 }
  0x2a   : > { %519 = vmatpush.bf16.msra.mxu0 %v1192_v0  ;;  %1289 = vmatpush.bf16.msra.mxu1 %v1192_v0  ;;  %v1190_v2 = vld [vmem:[#allocation6 + $0x28] sm:$0xff]  ;;  %v1189_v3 = vld [vmem:[#allocation6 + $0x20] sm:$0xff]  ;;  %v1188_v4 = vld [vmem:[#allocation6 + $0x18] sm:$0xff]  ;;  %s897_s30 = scalar_lea.hbm %s1953_s2, %s1193_s20  ;;  %s898_s4 = sshll.u32 %s1749_s1, 4  ;;  %s1836_s4 = int_to_ptr.vmem [resolvable:$true] %s898_s4 }
  0x2b   : > { %1290 = vmatpush.bf16.msra.mxu2 %v1192_v0  ;;  %1291 = vmatpush.bf16.msra.mxu3 %v1192_v0  ;;  %v1187_v5 = vld [vmem:[#allocation6 + $0x10] sm:$0xff]  ;;  %v1186_v6 = vld [vmem:[#allocation6 + $0x8] sm:$0xff]  ;;  %v1185_v7 = vld [vmem:[#allocation6] sm:$0xff]  ;;  %s900_s10 = sshll.u32 %s897_s30, 4  ;;  %s880_s19 = scalar_lea.sflag [#allocation5], %s1705_s6  ;;  %s1838_s10 = int_to_ptr.hbm [resolvable:$true] %s900_s10 }
  0x2c   : > { %v1169_v8 = vld [vmem:[%s1711_s7] sm:$0xff]  ;;  %v1170_v12 = vld [vmem:[%s1711_s7 + $0x8] sm:$0xff]  ;;  %v1171_v16 = vld [vmem:[%s1711_s7 + $0x10] sm:$0xff]  ;;  %s1469_s24 = sshra.s32 %s1838_s10, 4  ;;  %s1475_s29 = scalar_lea.hbm %s1953_s2, 256  ;;  %s1470_s24 = int_to_ptr.hbm [resolvable:$true] %s1469_s24 }
  0x2d   : > { %v1173_v9 = vld [vmem:[%s1711_s7 + $0x20] sm:$0xff]  ;;  %v1174_v13 = vld [vmem:[%s1711_s7 + $0x28] sm:$0xff]  ;;  %v1175_v17 = vld [vmem:[%s1711_s7 + $0x30] sm:$0xff]  ;;  %s1471_s25 = scalar_lea.hbm %s1470_s24, 128  ;;  %p1476_p10 = scmp.lt.s32.totalorder %s1470_s24, %s1953_s2 }
  0x2e   : > { %520 = vmatpush.bf16.msra.mxu0 %v1191_v1  ;;  %1292 = vmatpush.bf16.msra.mxu1 %v1191_v1  ;;  %v1177_v10 = vld [vmem:[%s1711_s7 + $0x40] sm:$0xff]  ;;  %v1178_v14 = vld [vmem:[%s1711_s7 + $0x48] sm:$0xff]  ;;  %v1179_v18 = vld [vmem:[%s1711_s7 + $0x50] sm:$0xff]  ;;  %p1472_p1 = scmp.ne.s32.totalorder %s1470_s24, %s1471_s25  ;;  %p1477_p12 = scmp.lt.s32.totalorder %s1475_s29, %s1471_s25 }
  0x2f   : > { %1293 = vmatpush.bf16.msra.mxu2 %v1191_v1  ;;  %1294 = vmatpush.bf16.msra.mxu3 %v1191_v1  ;;  %v1181_v11 = vld [vmem:[%s1711_s7 + $0x60] sm:$0xff]  ;;  %v1182_v15 = vld [vmem:[%s1711_s7 + $0x68] sm:$0xff]  ;;  %v1183_v19 = vld [vmem:[%s1711_s7 + $0x70] sm:$0xff] }
  0x30   : > { %v1172_v20 = vld [vmem:[%s1711_s7 + $0x18] sm:$0xff]  ;;  %p1473_p4 = pnand %p1472_p1, %p1682_p5  ;;  %p1478_p13 = por %p1477_p12, %p1476_p10 }
  0x31   : > { %v1176_v21 = vld [vmem:[%s1711_s7 + $0x38] sm:$0xff] }
  0x32   : > { %521 = vmatpush.bf16.msra.mxu0 %v1190_v2  ;;  %1295 = vmatpush.bf16.msra.mxu1 %v1190_v2  ;;  %v1180_v22 = vld [vmem:[%s1711_s7 + $0x58] sm:$0xff]  ;;  %p1474_p8 = pneg %p1473_p4 }
  0x33   : > { %1296 = vmatpush.bf16.msra.mxu2 %v1190_v2  ;;  %1297 = vmatpush.bf16.msra.mxu3 %v1190_v2  ;;  %v1184_v23 = vld [vmem:[%s1711_s7 + $0x78] sm:$0xff] }
  0x34   : > { %p1479_p0 = pnand %p1478_p13, %p1474_p8 }
  0x36   : > { %522 = vmatpush.bf16.msra.mxu0 %v1189_v3  ;;  %1298 = vmatpush.bf16.msra.mxu1 %v1189_v3 }
  0x37   : > { %1299 = vmatpush.bf16.msra.mxu2 %v1189_v3  ;;  %1300 = vmatpush.bf16.msra.mxu3 %v1189_v3 }
  0x3a   : > { %523 = vmatpush.bf16.msra.mxu0 %v1188_v4  ;;  %1301 = vmatpush.bf16.msra.mxu1 %v1188_v4 }
  0x3b   : > { %1302 = vmatpush.bf16.msra.mxu2 %v1188_v4  ;;  %1303 = vmatpush.bf16.msra.mxu3 %v1188_v4 }
  0x3e   : > { %524 = vmatpush.bf16.msra.mxu0 %v1187_v5  ;;  %1304 = vmatpush.bf16.msra.mxu1 %v1187_v5 }
  0x3f   : > { %1305 = vmatpush.bf16.msra.mxu2 %v1187_v5  ;;  %1306 = vmatpush.bf16.msra.mxu3 %v1187_v5 }
  0x42   : > { %525 = vmatpush.bf16.msra.mxu0 %v1186_v6  ;;  %1307 = vmatpush.bf16.msra.mxu1 %v1186_v6 }
  0x43   : > { %1308 = vmatpush.bf16.msra.mxu2 %v1186_v6  ;;  %1309 = vmatpush.bf16.msra.mxu3 %v1186_v6 }
  0x46   : > { %526 = vmatpush.bf16.msra.mxu0 %v1185_v7  ;;  %1310 = vmatpush.bf16.msra.mxu1 %v1185_v7 }
  0x47   : > { %1311 = vmatpush.bf16.msra.mxu2 %v1185_v7  ;;  %1312 = vmatpush.bf16.msra.mxu3 %v1185_v7 }
  0x49   : > { %527 = vmatmul.bf16.vlgmr.msra.gmra.mxu0 %v1169_v8  ;;  %547 = vmatmul.bf16.vlgmr.msra.gmra.mxu1 %v1173_v9 }
  0x4a   : > { %567 = vmatmul.bf16.vlgmr.msra.gmra.mxu2 %v1177_v10  ;;  %587 = vmatmul.bf16.vlgmr.msra.gmra.mxu3 %v1181_v11 }
  0x59   : > { %532 = vmatmul.bf16.gmra.mxu0 %v1170_v12  ;;  %552 = vmatmul.bf16.gmra.mxu1 %v1174_v13 }
  0x5a   : > { %572 = vmatmul.bf16.gmra.mxu2 %v1178_v14  ;;  %592 = vmatmul.bf16.gmra.mxu3 %v1182_v15 }
  0x69   : > { %537 = vmatmul.bf16.gmra.mxu0 %v1171_v16  ;;  %557 = vmatmul.bf16.gmra.mxu1 %v1175_v17 }
  0x6a   : > { %577 = vmatmul.bf16.gmra.mxu2 %v1179_v18  ;;  %597 = vmatmul.bf16.gmra.mxu3 %v1183_v19 }
  0x79   : > { %542 = vmatmul.bf16.gmra.mxu0 %v1172_v20  ;;  %562 = vmatmul.bf16.gmra.mxu1 %v1176_v21 }
  0x7a   : > { %582 = vmatmul.bf16.gmra.mxu2 %v1180_v22  ;;  %602 = vmatmul.bf16.gmra.mxu3 %v1184_v23 }
  0xc6   : > { %v528_v24 = vpop.f32.mrf.mxu0  ;;  %v1737_v25 = vpop.f32.mrf.mxu1 }
  0xc7   : > { %v809_v57 = vmul.f32 %v528_v24, %v528_v24 }
  0xcd   : > { %v1739_v26 = vpop.f32.mrf.mxu2  ;;  %v1745_v31 = vpop.f32.mrf.mxu3 }
  0xce   : > { %v530_v27 = vpop.f32.mrf.mxu0  ;;  %v1741_v28 = vpop.f32.mrf.mxu1 }
  0xcf   : > { %v1197_v29 = vpack.c.bf16 %v530_v27, %v528_v24  ;;  %v1217_v30 = vpack.c.bf16 %v1741_v28, %v1737_v25  ;;  %v810_v56 = vmul.f32 %v530_v27, %v530_v27  ;;  %v771_v59 = vadd.f32 %v530_v27, %v528_v24 }
  0xd0   : > { %v817_v27 = vmul.f32 %v1737_v25, %v1737_v25 }
  0xd1   : > { %1198 = vst [vmem:[%s1749_s1] sm:$0xff] %v1197_v29   ;;  %v841_v60 = vadd.f32 %v810_v56, %v809_v57 }
  0xd2   : > { %1277 = vst [vmem:[%s1749_s1 + $0x20] sm:$0xff] %v1217_v30  }
  0xd5   : > { %v1753_v32 = vpop.f32.mrf.mxu2  ;;  %v1759_v36 = vpop.f32.mrf.mxu3 }
  0xd6   : > { %v533_v33 = vpop.f32.mrf.mxu0  ;;  %v1755_v34 = vpop.f32.mrf.mxu1  ;;  %v1237_v35 = vpack.c.bf16 %v1753_v32, %v1739_v26  ;;  %v1257_v37 = vpack.c.bf16 %v1759_v36, %v1745_v31 }
  0xd7   : > { %v811_v58 = vmul.f32 %v533_v33, %v533_v33  ;;  %v772_v62 = vadd.f32 %v771_v59, %v533_v33 }
  0xd8   : > { %1281 = vst [vmem:[%s1749_s1 + $0x40] sm:$0xff] %v1237_v35  }
  0xd9   : > { %1285 = vst [vmem:[%s1749_s1 + $0x60] sm:$0xff] %v1257_v37   ;;  %v842_v0 = vadd.f32 %v841_v60, %v811_v58 }
  0xdd   : > { %v1765_v38 = vpop.f32.mrf.mxu2  ;;  %v1771_v43 = vpop.f32.mrf.mxu3 }
  0xde   : > { %v535_v39 = vpop.f32.mrf.mxu0  ;;  %v1767_v40 = vpop.f32.mrf.mxu1 }
  0xdf   : > { %v1202_v41 = vpack.c.bf16 %v535_v39, %v533_v33  ;;  %v1222_v42 = vpack.c.bf16 %v1767_v40, %v1755_v34  ;;  %v812_v61 = vmul.f32 %v535_v39, %v535_v39  ;;  %v773_v5 = vadd.f32 %v772_v62, %v535_v39 }
  0xe0   : > { %v818_v33 = vmul.f32 %v1741_v28, %v1741_v28  ;;  %v819_v39 = vmul.f32 %v1755_v34, %v1755_v34 }
  0xe1   : > { %1274 = vst [vmem:[%s1749_s1 + $0x8] sm:$0xff] %v1202_v41   ;;  %v843_v7 = vadd.f32 %v842_v0, %v812_v61 }
  0xe2   : > { %1278 = vst [vmem:[%s1749_s1 + $0x28] sm:$0xff] %v1222_v42  }
  0xe5   : > { %v1775_v44 = vpop.f32.mrf.mxu2  ;;  %v1781_v48 = vpop.f32.mrf.mxu3 }
  0xe6   : > { %v538_v45 = vpop.f32.mrf.mxu0  ;;  %v1777_v46 = vpop.f32.mrf.mxu1  ;;  %v1242_v47 = vpack.c.bf16 %v1775_v44, %v1765_v38  ;;  %v1262_v49 = vpack.c.bf16 %v1781_v48, %v1771_v43 }
  0xe7   : > { %v813_v1 = vmul.f32 %v538_v45, %v538_v45  ;;  %v774_v10 = vadd.f32 %v773_v5, %v538_v45 }
  0xe8   : > { %1282 = vst [vmem:[%s1749_s1 + $0x48] sm:$0xff] %v1242_v47   ;;  %v820_v47 = vmul.f32 %v1767_v40, %v1767_v40 }
  0xe9   : > { %1286 = vst [vmem:[%s1749_s1 + $0x68] sm:$0xff] %v1262_v49   ;;  %v844_v11 = vadd.f32 %v843_v7, %v813_v1 }
  0xed   : > { %v1787_v50 = vpop.f32.mrf.mxu2  ;;  %v1793_v55 = vpop.f32.mrf.mxu3 }
  0xee   : > { %v540_v51 = vpop.f32.mrf.mxu0  ;;  %v1789_v52 = vpop.f32.mrf.mxu1 }
  0xef   : > { %v1207_v53 = vpack.c.bf16 %v540_v51, %v538_v45  ;;  %v1227_v54 = vpack.c.bf16 %v1789_v52, %v1777_v46  ;;  %v814_v8 = vmul.f32 %v540_v51, %v540_v51  ;;  %v775_v13 = vadd.f32 %v774_v10, %v540_v51 }
  0xf1   : > { %1275 = vst [vmem:[%s1749_s1 + $0x10] sm:$0xff] %v1207_v53   ;;  %v845_v14 = vadd.f32 %v844_v11, %v814_v8  ;;  %v821_v53 = vmul.f32 %v1777_v46, %v1777_v46 }
  0xf2   : > { %1279 = vst [vmem:[%s1749_s1 + $0x30] sm:$0xff] %v1227_v54  }
  0xf5   : > { %v1797_v63 = vpop.f32.mrf.mxu2  ;;  %v1803_v6 = vpop.f32.mrf.mxu3 }
  0xf6   : > { %v543_v2 = vpop.f32.mrf.mxu0  ;;  %v1799_v3 = vpop.f32.mrf.mxu1  ;;  %v1247_v4 = vpack.c.bf16 %v1797_v63, %v1787_v50  ;;  %v1267_v9 = vpack.c.bf16 %v1803_v6, %v1793_v55 }
  0xf7   : > { %v815_v12 = vmul.f32 %v543_v2, %v543_v2  ;;  %v776_v15 = vadd.f32 %v775_v13, %v543_v2 }
  0xf8   : > { %1283 = vst [vmem:[%s1749_s1 + $0x50] sm:$0xff] %v1247_v4  }
  0xf9   : > { %1287 = vst [vmem:[%s1749_s1 + $0x70] sm:$0xff] %v1267_v9   ;;  %v846_v17 = vadd.f32 %v845_v14, %v815_v12 }
  0xfd   : > { %v1809_v16 = vpop.f32.mrf.mxu2  ;;  %v1813_v24 = vpop.f32.mrf.mxu3 }
  0xfe   : > { %v545_v18 = vpop.f32.mrf.mxu0  ;;  %v565_v19 = vpop.f32.mrf.mxu1 }
  0xff   : > { %v1212_v20 = vpack.c.bf16 %v545_v18, %v543_v2  ;;  %v777_v21 = vadd.f32 %v776_v15, %v545_v18  ;;  %v816_v22 = vmul.f32 %v545_v18, %v545_v18  ;;  %v1232_v23 = vpack.c.bf16 %v565_v19, %v1799_v3 }
 0x101   : > { %1276 = vst [vmem:[%s1749_s1 + $0x18] sm:$0xff] %v1212_v20   ;;  %v778_v29 = vadd.f32 %v777_v21, %v1737_v25  ;;  %v847_v30 = vadd.f32 %v846_v17, %v816_v22 }
 0x102   : > { %1280 = vst [vmem:[%s1749_s1 + $0x38] sm:$0xff] %v1232_v23  }
 0x103   : > { %v779_v35 = vadd.f32 %v778_v29, %v1741_v28  ;;  %v848_v37 = vadd.f32 %v847_v30, %v817_v27 }
 0x105   : > { %v780_v25 = vadd.f32 %v779_v35, %v1755_v34  ;;  %v849_v41 = vadd.f32 %v848_v37, %v818_v33  ;;  %v585_v42 = vpop.f32.mrf.mxu2  ;;  %v1834_v51 = vpop.f32.mrf.mxu3 }
 0x106   : > { %v1252_v45 = vpack.c.bf16 %v585_v42, %v1809_v16  ;;  %v1272_v34 = vpack.c.bf16 %v1834_v51, %v1813_v24 }
 0x107   : > { %v850_v49 = vadd.f32 %v849_v41, %v819_v39  ;;  %v781_v28 = vadd.f32 %v780_v25, %v1767_v40  ;;  %v822_v40 = vmul.f32 %v1789_v52, %v1789_v52 }
 0x108   : > { %1284 = vst [vmem:[%s1749_s1 + $0x58] sm:$0xff] %v1252_v45  }
 0x109   : > { %v782_v54 = vadd.f32 %v781_v28, %v1777_v46  ;;  %v851_v56 = vadd.f32 %v850_v49, %v820_v47  ;;  %1288 = vst [vmem:[%s1749_s1 + $0x78] sm:$0xff] %v1272_v34  }
 0x10b   : > { %v783_v57 = vadd.f32 %v782_v54, %v1789_v52  ;;  %v852_v58 = vadd.f32 %v851_v56, %v821_v53 }
 0x10c   : > { %1482 = shalt.err (!%p1479_p0)
}
 0x10d   : > { %s1578_s11 = smov 64   ;;  %s1579_s7 = smov 4   ;;  %v784_v46 = vadd.f32 %v783_v57, %v1799_v3  ;;  %v823_v52 = vmul.f32 %v1799_v3, %v1799_v3  ;;  %v853_v59 = vadd.f32 %v852_v58, %v822_v40  ;;  %v824_v62 = vmul.f32 %v565_v19, %v565_v19 }
 0x10e   : > { %1319 = dma.vmem_to_hbm [thread:$0]  (%p1682_p5), %s1836_s4, 2048, %s1838_s10, %s880_s19, %s1578_s11, %s1578_s11, %s1579_s7   ;;  %v825_v0 = vmul.f32 %v1739_v26, %v1739_v26  ;;  %v826_v4 = vmul.f32 %v1753_v32, %v1753_v32  ;;  %v827_v8 = vmul.f32 %v1765_v38, %v1765_v38  ;;  %v828_v10 = vmul.f32 %v1775_v44, %v1775_v44 }
 0x10f   : > { %v854_v60 = vadd.f32 %v853_v59, %v823_v52  ;;  %v785_v61 = vadd.f32 %v784_v46, %v565_v19  ;;  %v830_v15 = vmul.f32 %v1797_v63, %v1797_v63  ;;  %v831_v19 = vmul.f32 %v1809_v16, %v1809_v16  ;;  %s1064_s1 = sshll.u32 %s1705_s6, 1  ;;  %s1165_s20 = sshll.u32 %s1565_s15, 1 }
 0x110   : > { %v832_v21 = vmul.f32 %v585_v42, %v585_v42  ;;  %v833_v22 = vmul.f32 %v1745_v31, %v1745_v31  ;;  %v834_v27 = vmul.f32 %v1759_v36, %v1759_v36  ;;  %v835_v30 = vmul.f32 %v1771_v43, %v1771_v43  ;;  %s914_s30 = scalar_lea.hbm %s1954_s3, %s1165_s20  ;;  %s255_s4 = scalar_lea.vmem [#allocation9], %s1064_s1 }
 0x111   : > { %v786_v1 = vadd.f32 %v785_v61, %v1739_v26  ;;  %v855_v2 = vadd.f32 %v854_v60, %v824_v62  ;;  %v829_v26 = vmul.f32 %v1787_v50, %v1787_v50  ;;  %v836_v35 = vmul.f32 %v1781_v48, %v1781_v48  ;;  %s916_s10 = sshll.u32 %s255_s4, 4  ;;  %s918_s19 = sshll.u32 %s914_s30, 4  ;;  %s917_s10 = int_to_ptr.vmem [resolvable:$true] %s916_s10  ;;  %s919_s19 = int_to_ptr.hbm [resolvable:$true] %s918_s19 }
 0x112   : > { %s885_s15 = scalar_lea.sflag [#allocation10], %s1705_s6  ;;  %s1497_s24 = sshra.s32 %s919_s19, 4  ;;  %s1498_s24 = int_to_ptr.hbm [resolvable:$true] %s1497_s24 }
 0x113   : > { %v787_v5 = vadd.f32 %v786_v1, %v1753_v32  ;;  %v856_v7 = vadd.f32 %v855_v2, %v825_v0  ;;  %s1499_s25 = scalar_lea.hbm %s1498_s24, 2  ;;  %s1503_s29 = scalar_lea.hbm %s1954_s3, 4 }
 0x114   : > { %p1500_p3 = scmp.ne.s32.totalorder %s1498_s24, %s1499_s25  ;;  %p1504_p2 = scmp.lt.s32.totalorder %s1498_s24, %s1954_s3 }
 0x115   : > { %v788_v3 = vadd.f32 %v787_v5, %v1765_v38  ;;  %v857_v9 = vadd.f32 %v856_v7, %v826_v4  ;;  %p1505_p1 = scmp.lt.s32.totalorder %s1503_s29, %s1499_s25 }
 0x116   : > { %p1501_p7 = pnand %p1500_p3, %p1682_p5 }
 0x117   : > { %v858_v11 = vadd.f32 %v857_v9, %v827_v8  ;;  %v789_v12 = vadd.f32 %v788_v3, %v1775_v44  ;;  %p1506_p4 = por %p1505_p1, %p1504_p2 }
 0x118   : > { %p1502_p9 = pneg %p1501_p7 }
 0x119   : > { %v790_v13 = vadd.f32 %v789_v12, %v1787_v50  ;;  %v859_v14 = vadd.f32 %v858_v11, %v828_v10 }
 0x11a   : > { %p1507_p8 = pnand %p1506_p4, %p1502_p9 }
 0x11b   : > { %v791_v32 = vadd.f32 %v790_v13, %v1797_v63  ;;  %v860_v17 = vadd.f32 %v859_v14, %v829_v26 }
 0x11d   : > { %v861_v38 = vadd.f32 %v860_v17, %v830_v15  ;;  %v792_v18 = vadd.f32 %v791_v32, %v1809_v16 }
 0x11f   : > { %v862_v20 = vadd.f32 %v861_v38, %v831_v19  ;;  %v793_v44 = vadd.f32 %v792_v18, %v585_v42 }
 0x121   : > { %v794_v50 = vadd.f32 %v793_v44, %v1745_v31  ;;  %v863_v23 = vadd.f32 %v862_v20, %v832_v21  ;;  %v837_v31 = vmul.f32 %v1793_v55, %v1793_v55 }
 0x123   : > { %v795_v63 = vadd.f32 %v794_v50, %v1759_v36  ;;  %v864_v29 = vadd.f32 %v863_v23, %v833_v22 }
 0x125   : > { %v796_v16 = vadd.f32 %v795_v63, %v1771_v43  ;;  %v865_v33 = vadd.f32 %v864_v29, %v834_v27  ;;  %v838_v43 = vmul.f32 %v1803_v6, %v1803_v6 }
 0x127   : > { %v866_v37 = vadd.f32 %v865_v33, %v835_v30  ;;  %v797_v39 = vadd.f32 %v796_v16, %v1781_v48  ;;  %v839_v48 = vmul.f32 %v1813_v24, %v1813_v24 }
 0x129   : > { %v798_v25 = vadd.f32 %v797_v39, %v1793_v55  ;;  %v867_v36 = vadd.f32 %v866_v37, %v836_v35  ;;  %v840_v55 = vmul.f32 %v1834_v51, %v1834_v51 }
 0x12b   : > { %v799_v41 = vadd.f32 %v798_v25, %v1803_v6  ;;  %v868_v42 = vadd.f32 %v867_v36, %v837_v31 }
 0x12d   : > { %v869_v45 = vadd.f32 %v868_v42, %v838_v43  ;;  %v800_v47 = vadd.f32 %v799_v41, %v1813_v24 }
 0x12f   : > { %v870_v49 = vadd.f32 %v869_v45, %v839_v48  ;;  %v801_v28 = vadd.f32 %v800_v47, %v1834_v51 }
 0x131   : > { %v802_v34 = vrot.slane %v801_v28, 4  ;;  %v871_v53 = vadd.f32 %v870_v49, %v840_v55 }
 0x133   : > { %v803_v54 = vadd.f32 %v802_v34, %v801_v28  ;;  %v872_v56 = vrot.slane %v871_v53, 4 }
 0x135   : > { %v804_v6 = vrot.slane %v803_v54, 2  ;;  %v873_v40 = vadd.f32 %v872_v56, %v871_v53 }
 0x137   : > { %v805_v57 = vadd.f32 %v804_v6, %v803_v54  ;;  %v874_v58 = vrot.slane %v873_v40, 2 }
 0x139   : > { %v806_v24 = vrot.slane %v805_v57, 1  ;;  %v875_v46 = vadd.f32 %v874_v58, %v873_v40 }
 0x13b   : > { %v807_v51 = vadd.f32 %v806_v24, %v805_v57  ;;  %v876_v52 = vrot.slane %v875_v46, 1 }
 0x13d   : > { %v877_v59 = vadd.f32 %v876_v52, %v875_v46  ;;  %808 = vst [vmem:[%s255_s4] sm:$0x1] %v807_v51 }
 0x13f   : > { %878 = vst [vmem:[%s255_s4 + $0x1] sm:$0x1] %v877_v59 }
 0x140   : > { %1510 = shalt.err (!%p1507_p8)
}
 0x141   : > { %1320 = dma.vmem_to_hbm [thread:$0]  (%p1682_p5), %s917_s10, 32, %s919_s19, %s885_s15  }
 0x142 PF: > { %s930_s6 = sand.u32 1, %s1553_s12   ;;  %p1332_p10 = pnand %p1056_p11, %p1649_p6 }
 0x143   : > { %s931_s11 = scalar_lea.sflag [#allocation5], %s930_s6 }
 0x144   : > { %p1333_p12 = pneg %p1332_p10 }
 0x146   : > { %1544 = dma.done.wait (%p1333_p12), %s931_s11, 2048  }
 0x147   : > { %1546 = vsyncadd (%p1333_p12), %s931_s11, 4294965248  ;;  %s941_s7 = scalar_lea.sflag [#allocation10], %s930_s6 }
 0x148   : > { %1548 = dma.done.wait (%p1333_p12), %s941_s7, 32  }
 0x149   : > { %1550 = vsyncadd (%p1333_p12), %s941_s7, 4294967264  ;;  %s24_s17 = sadd.s32 1, %s1573_s17   ;;  %s1966_s12 = smov %s1557_s13 }
 0x14a   : > { %p21_p13 = scmp.ge.s32.totalorder %s24_s17, 4   ;;  %s1967_s13 = smov %s1561_s14 }
 0x14b   : > { %s1968_s14 = smov %s1691_s18  ;;  %s1969_s15 = smov %s1569_s16 }
 0x14c   : > { %s1970_s16 = smov %s1972_s5  ;;  %23 = sbr.rel (!%p21_p13) target bundleno = 11 (0xb), region = 103 }
 0x151   :  { %947 = vsyncpa [#allocation4], 1 }
 0x152   :  { %949 = vsyncpa [#allocation4 + $0x1], 1 }
 0x153   :  { %950 = vsyncpa [#allocation7], 1 }
 0x154   :  { %951 = vsyncpa [#allocation5], 1 }
 0x155   :  { %953 = vsyncpa [#allocation5 + $0x1], 1 }
 0x156   :  { %954 = vsyncpa [#allocation10], 1 }
 0x157   :  { %956 = vsyncpa [#allocation10 + $0x1], 1 }

</bundles_post_ra>
